<compile_context>
chip_gen: v6e
topology: v6e:2x2x1
jax: 0.10.0
libtpu: 0.0.40
codegen_flags: <defaults>
</compile_context>

<pallas_src>
import jax
import jax.numpy as jnp
from jax.experimental import pallas as pl
from jax.experimental.pallas import tpu as pltpu

BN_EPS = 1e-5
SIMAM_LAMBDA = 1e-5


def _make_kernel(H, W, Cin, Cout, use_shortcut, e_lambda):
    HW = H * W
    PAD = W + 1                       # flat zero-pad per side; covers every 3x3 tap shift

    def kernel(x_ref, hmask_ref, w1_ref, s1_ref, b1_ref, w2_ref, s2_ref, b2_ref, *rest):
        if use_shortcut:
            (ws_ref, ss_ref, bs_ref, out_ref,
             padx_ref, pad1_ref, patch1_ref, patch2_ref) = rest
        else:
            out_ref, padx_ref, pad1_ref, patch1_ref, patch2_ref = rest

        x = x_ref[0]                                      # (Cin, H*W)
        m_left = hmask_ref[0:1, :]                        # zero col j==0   (dw = -1)
        m_right = hmask_ref[1:2, :]                       # zero col j==W-1 (dw = +1)

        def im2col(src, pad_ref, patch_ref, C):
            """src: (C, HW). Builds the (9*C, HW) im2col matrix into patch_ref."""
            # zero only the two small halo strips, every step (core/megacore safe)
            pad_ref[:, 0:PAD] = jnp.zeros((C, PAD), jnp.float32)
            pad_ref[:, PAD + HW:PAD + HW + PAD] = jnp.zeros((C, PAD), jnp.float32)
            pad_ref[:, PAD:PAD + HW] = src
            for kh in range(3):
                for kw in range(3):
                    dh, dw = kh - 1, kw - 1
                    start = PAD + dh * W + dw             # static python int
                    slab = pad_ref[:, start:start + HW]   # shifted window (C, HW)
                    if dw == -1:                          # mask horizontal wrap
                        slab = slab * m_left
                    elif dw == 1:
                        slab = slab * m_right
                    t = kh * 3 + kw
                    patch_ref[t * C:(t + 1) * C, :] = slab
            return patch_ref[...]                         # (9*C, HW)

        # ---- conv1 (3x3) as one MXU matmul, then folded BN1 + ReLU ----
        p1 = im2col(x, padx_ref, patch1_ref, Cin)
        acc1 = jnp.dot(w1_ref[...], p1, preferred_element_type=jnp.float32)
        out1 = jnp.maximum(acc1 * s1_ref[...] + b1_ref[...], 0.0)      # (Cout, HW)

        # ---- conv2 (3x3) as one MXU matmul, then folded BN2 ----
        p2 = im2col(out1, pad1_ref, patch2_ref, Cout)
        acc2 = jnp.dot(w2_ref[...], p2, preferred_element_type=jnp.float32)
        y2 = acc2 * s2_ref[...] + b2_ref[...]                          # (Cout, HW)

        # ---- SimAM (per-channel spatial stats along the lane axis) ----
        inv_n = 1.0 / float(HW - 1)
        mu = jnp.mean(y2, axis=1, keepdims=True)                       # (Cout, 1)
        d = (y2 - mu) ** 2
        denom = 4.0 * (jnp.sum(d, axis=1, keepdims=True) * inv_n + e_lambda)
        y_att = d * pl.reciprocal(denom) + 0.5
        att = pl.reciprocal(1.0 + jnp.exp(-y_att))                     # sigmoid
        out = y2 * att

        # ---- residual ----
        if use_shortcut:
            res = jnp.dot(ws_ref[...], x, preferred_element_type=jnp.float32)
            res = res * ss_ref[...] + bs_ref[...]
        else:
            res = x

        out_ref[0] = jnp.maximum(out + res, 0.0)

    return kernel


def res_simam_block(x_nchw, params, e_lambda=SIMAM_LAMBDA):
    """Forward pass of Res_SimAM_block (stride=1, eval-mode BN)."""
    B, Cin, H, W = x_nchw.shape
    Cout = params["w1"].shape[0]
    use_shortcut = Cout != Cin            # stride fixed at 1
    HW = H * W
    PAD = W + 1
    PFLAT = HW + 2 * PAD

    # channels-first, flattened spatial; no host-side transpose or spatial pad.
    x_flat = x_nchw.reshape(B, Cin, HW).astype(jnp.float32)

    # horizontal-wrap masks for the flat-shift im2col.
    col = jnp.arange(HW, dtype=jnp.int32) % W
    hmask = jnp.stack([(col != 0), (col != W - 1)]).astype(jnp.float32)   # (2, HW)

    def fold_bn(bias, gamma, beta, rm, rv):
        scale = gamma / jnp.sqrt(rv + BN_EPS)
        shift = (bias - rm) * scale + beta
        return (scale.reshape(-1, 1).astype(jnp.float32),
                shift.reshape(-1, 1).astype(jnp.float32))

    # torch conv weight (Cout, Cin, kh, kw) -> (Cout, 9*Cin), col = (kh*3+kw)*Cin + ci
    def flatten_w(w):
        co, ci, _, _ = w.shape
        return jnp.transpose(w, (0, 2, 3, 1)).reshape(co, 9 * ci).astype(jnp.float32)

    w1f = flatten_w(params["w1"])
    w2f = flatten_w(params["w2"])
    s1, b1 = fold_bn(params["b1"], params["bn1_g"], params["bn1_b"],
                     params["bn1_rm"], params["bn1_rv"])
    s2, b2 = fold_bn(params["b2"], params["bn2_g"], params["bn2_b"],
                     params["bn2_rm"], params["bn2_rv"])

    def full(a):
        return pl.BlockSpec(a.shape, lambda b, _n=a.ndim: (0,) * _n)

    in_specs = [pl.BlockSpec((1, Cin, HW), lambda b: (b, 0, 0)),
                full(hmask), full(w1f), full(s1), full(b1),
                full(w2f), full(s2), full(b2)]
    operands = [x_flat, hmask, w1f, s1, b1, w2f, s2, b2]

    if use_shortcut:
        ws = params["ws"][:, :, 0, 0].astype(jnp.float32)              # (Cout, Cin)
        ss, bs = fold_bn(params["bs"], params["bns_g"], params["bns_b"],
                         params["bns_rm"], params["bns_rv"])
        in_specs += [full(ws), full(ss), full(bs)]
        operands += [ws, ss, bs]

    kernel = _make_kernel(H, W, Cin, Cout, use_shortcut, e_lambda)

    conv_flops = 2 * HW * (9 * Cin * Cout + 9 * Cout * Cout)
    if use_shortcut:
        conv_flops += 2 * HW * Cin * Cout
    flops = B * (conv_flops + 12 * HW * Cout)
    bytes_accessed = 4 * (B * Cin * HW + B * Cout * HW + 2 * HW
                          + 9 * Cin * Cout + 9 * Cout * Cout + 4 * Cout
                          + (Cin * Cout + 2 * Cout if use_shortcut else 0))

    out_flat = pl.pallas_call(
        kernel,
        out_shape=jax.ShapeDtypeStruct((B, Cout, HW), jnp.float32),
        grid=(B,),
        in_specs=in_specs,
        out_specs=pl.BlockSpec((1, Cout, HW), lambda b: (b, 0, 0)),
        scratch_shapes=[
            pltpu.VMEM((Cin, PFLAT), jnp.float32),       # flat zero-padded input
            pltpu.VMEM((Cout, PFLAT), jnp.float32),      # flat zero-padded conv1 output
            pltpu.VMEM((9 * Cin, HW), jnp.float32),      # im2col matrix, conv1
            pltpu.VMEM((9 * Cout, HW), jnp.float32),     # im2col matrix, conv2
        ],
        compiler_params=pltpu.CompilerParams(dimension_semantics=("parallel",)),
        cost_estimate=pl.CostEstimate(flops=flops, transcendentals=B * HW * Cout,
                                      bytes_accessed=bytes_accessed),
    )(*operands)

    return out_flat.reshape(B, Cout, H, W)   # already NCHW; reshape is free


# ---------------------------- pure-JAX reference ----------------------------
def _ref_forward(x, params, e_lambda=SIMAM_LAMBDA):
    def conv(x, w, b, stride=1, pad=1):
        y = jax.lax.conv_general_dilated(
            x, w, window_strides=(stride, stride),
            padding=((pad, pad), (pad, pad)),
            dimension_numbers=("NCHW", "OIHW", "NCHW"))
        return y + b[None, :, None, None]

    def bn(y, g, bt, rm, rv):
        return (y - rm[None, :, None, None]) / jnp.sqrt(rv[None, :, None, None] + BN_EPS) \
            * g[None, :, None, None] + bt[None, :, None, None]

    Cin, Cout = x.shape[1], params["w1"].shape[0]
    residual = x
    if Cout != Cin:
        residual = bn(conv(x, params["ws"], params["bs"], pad=0),
                      params["bns_g"], params["bns_b"], params["bns_rm"], params["bns_rv"])
    out = jnp.maximum(bn(conv(x, params["w1"], params["b1"]),
                         params["bn1_g"], params["bn1_b"], params["bn1_rm"], params["bn1_rv"]), 0.0)
    out = bn(conv(out, params["w2"], params["b2"]),
             params["bn2_g"], params["bn2_b"], params["bn2_rm"], params["bn2_rv"])
    # SimAM
    b_, c_, h_, w_ = out.shape
    n = w_ * h_ - 1
    d = (out - out.mean(axis=(2, 3), keepdims=True)) ** 2
    y = d / (4 * (d.sum(axis=(2, 3), keepdims=True) / n + e_lambda)) + 0.5
    out = out * jax.nn.sigmoid(y)
    return jnp.maximum(out + residual, 0.0)


def _make_params(key, cin, cout, use_shortcut):
    ks = jax.random.split(key, 16)
    p = {
        "w1": 0.1 * jax.random.normal(ks[0], (cout, cin, 3, 3), jnp.float32),
        "b1": 0.1 * jax.random.normal(ks[1], (cout,), jnp.float32),
        "bn1_g": 1.0 + 0.1 * jax.random.normal(ks[2], (cout,), jnp.float32),
        "bn1_b": 0.1 * jax.random.normal(ks[3], (cout,), jnp.float32),
        "bn1_rm": 0.1 * jax.random.normal(ks[4], (cout,), jnp.float32),
        "bn1_rv": 0.5 + jnp.abs(jax.random.normal(ks[5], (cout,), jnp.float32)),
        "w2": 0.1 * jax.random.normal(ks[6], (cout, cout, 3, 3), jnp.float32),
        "b2": 0.1 * jax.random.normal(ks[7], (cout,), jnp.float32),
        "bn2_g": 1.0 + 0.1 * jax.random.normal(ks[8], (cout,), jnp.float32),
        "bn2_b": 0.1 * jax.random.normal(ks[9], (cout,), jnp.float32),
        "bn2_rm": 0.1 * jax.random.normal(ks[10], (cout,), jnp.float32),
        "bn2_rv": 0.5 + jnp.abs(jax.random.normal(ks[11], (cout,), jnp.float32)),
    }
    if use_shortcut:
        p.update({
            "ws": 0.1 * jax.random.normal(ks[12], (cout, cin, 1, 1), jnp.float32),
            "bs": 0.1 * jax.random.normal(ks[13], (cout,), jnp.float32),
            "bns_g": 1.0 + 0.1 * jax.random.normal(ks[14], (cout,), jnp.float32),
            "bns_b": 0.1 * jax.random.normal(ks[15], (cout,), jnp.float32),
            "bns_rm": jnp.zeros((cout,), jnp.float32),
            "bns_rv": jnp.ones((cout,), jnp.float32),
        })
    return p


if __name__ == "__main__":
    key = jax.random.PRNGKey(0)
    kx, kp1, kp2 = jax.random.split(key, 3)

    B, H, W = 2, 16, 16

    # case 1: in_channels == out_channels, stride=1 -> identity shortcut
    x1 = jax.random.normal(kx, (B, 4, H, W), jnp.float32)
    p1 = _make_params(kp1, 4, 4, use_shortcut=False)
    out1 = jax.block_until_ready(res_simam_block(x1, p1))
    ref1 = _ref_forward(x1, p1)
    assert jnp.allclose(out1, ref1, rtol=1e-3, atol=1e-3), float(jnp.max(jnp.abs(out1 - ref1)))

    # case 2: in_channels != out_channels -> 1x1 conv + BN shortcut
    p2 = _make_params(kp2, 4, 8, use_shortcut=True)
    out2 = jax.block_until_ready(res_simam_block(x1, p2))
    ref2 = _ref_forward(x1, p2)
    assert jnp.allclose(out2, ref2, rtol=1e-3, atol=1e-3), float(jnp.max(jnp.abs(out2 - ref2)))

    print("KERNEL_OK")
</pallas_src>

<mosaic_0001>
module attributes {stable_mosaic.version = 11 : i64} {
  func.func @kernel(%arg0: i32, %arg1: memref<1x4x256xf32, #tpu.memory_space<vmem>>, %arg2: memref<2x256xf32, #tpu.memory_space<vmem>>, %arg3: memref<4x36xf32, #tpu.memory_space<vmem>>, %arg4: memref<4x1xf32, #tpu.memory_space<vmem>>, %arg5: memref<4x1xf32, #tpu.memory_space<vmem>>, %arg6: memref<4x36xf32, #tpu.memory_space<vmem>>, %arg7: memref<4x1xf32, #tpu.memory_space<vmem>>, %arg8: memref<4x1xf32, #tpu.memory_space<vmem>>, %arg9: memref<1x4x256xf32, #tpu.memory_space<vmem>>, %arg10: memref<4x290xf32, #tpu.memory_space<vmem>>, %arg11: memref<4x290xf32, #tpu.memory_space<vmem>>, %arg12: memref<36x256xf32, #tpu.memory_space<vmem>>, %arg13: memref<36x256xf32, #tpu.memory_space<vmem>>) attributes {dimension_semantics = [#tpu.dimension_semantics<parallel>], iteration_bounds = array<i64: 2>, scalar_prefetch = 0 : i64, scratch_operands = 4 : i64, tpu.core_type = #tpu.core_type<tc>, window_params = [{transform_indices = @transform_0, window_bounds = array<i64: 1, 4, 256>}, {pipeline_mode = #tpu.pipeline_mode<synchronous>, transform_indices = @transform_1, window_bounds = array<i64: 2, 256>}, {pipeline_mode = #tpu.pipeline_mode<synchronous>, transform_indices = @transform_2, window_bounds = array<i64: 4, 36>}, {pipeline_mode = #tpu.pipeline_mode<synchronous>, transform_indices = @transform_3, window_bounds = array<i64: 4, 1>}, {pipeline_mode = #tpu.pipeline_mode<synchronous>, transform_indices = @transform_4, window_bounds = array<i64: 4, 1>}, {pipeline_mode = #tpu.pipeline_mode<synchronous>, transform_indices = @transform_5, window_bounds = array<i64: 4, 36>}, {pipeline_mode = #tpu.pipeline_mode<synchronous>, transform_indices = @transform_6, window_bounds = array<i64: 4, 1>}, {pipeline_mode = #tpu.pipeline_mode<synchronous>, transform_indices = @transform_7, window_bounds = array<i64: 4, 1>}, {transform_indices = @transform_8, window_bounds = array<i64: 1, 4, 256>}]} {
    %c0 = arith.constant 0 : index
    %c0_0 = arith.constant 0 : index
    %c0_1 = arith.constant 0 : index
    %0 = vector.load %arg1[%c0, %c0_0, %c0_1] : memref<1x4x256xf32, #tpu.memory_space<vmem>>, vector<1x4x256xf32>
    %1 = vector.shape_cast %0 : vector<1x4x256xf32> to vector<4x256xf32>
    %c0_2 = arith.constant 0 : index
    %c0_3 = arith.constant 0 : index
    %2 = vector.load %arg2[%c0_2, %c0_3] : memref<2x256xf32, #tpu.memory_space<vmem>>, vector<1x256xf32>
    %c1 = arith.constant 1 : index
    %c0_4 = arith.constant 0 : index
    %3 = vector.load %arg2[%c1, %c0_4] : memref<2x256xf32, #tpu.memory_space<vmem>>, vector<1x256xf32>
    %cst = arith.constant 0.000000e+00 : f32
    %4 = vector.broadcast %cst : f32 to vector<4x17xf32>
    %c0_5 = arith.constant 0 : index
    %c0_6 = arith.constant 0 : index
    %5 = vector.load %arg10[%c0_5, %c0_6] : memref<4x290xf32, #tpu.memory_space<vmem>>, vector<4x17xf32>
    tpu.vector_store %arg10[%c0_5, %c0_6], %4 {strides = array<i32>} : memref<4x290xf32, #tpu.memory_space<vmem>>, vector<4x17xf32>,
    %cst_7 = arith.constant 0.000000e+00 : f32
    %6 = vector.broadcast %cst_7 : f32 to vector<4x17xf32>
    %c0_8 = arith.constant 0 : index
    %c273 = arith.constant 273 : index
    %7 = vector.load %arg10[%c0_8, %c273] : memref<4x290xf32, #tpu.memory_space<vmem>>, vector<4x17xf32>
    tpu.vector_store %arg10[%c0_8, %c273], %6 {strides = array<i32>} : memref<4x290xf32, #tpu.memory_space<vmem>>, vector<4x17xf32>,
    %c0_9 = arith.constant 0 : index
    %c17 = arith.constant 17 : index
    %8 = vector.load %arg10[%c0_9, %c17] : memref<4x290xf32, #tpu.memory_space<vmem>>, vector<4x256xf32>
    tpu.vector_store %arg10[%c0_9, %c17], %1 {strides = array<i32>} : memref<4x290xf32, #tpu.memory_space<vmem>>, vector<4x256xf32>,
    %c0_10 = arith.constant 0 : index
    %c0_11 = arith.constant 0 : index
    %9 = vector.load %arg10[%c0_10, %c0_11] : memref<4x290xf32, #tpu.memory_space<vmem>>, vector<4x256xf32>
    %10 = vector.broadcast %2 : vector<1x256xf32> to vector<4x256xf32>
    %11 = arith.mulf %9, %10 : vector<4x256xf32>
    %c0_12 = arith.constant 0 : index
    %c0_13 = arith.constant 0 : index
    %12 = vector.load %arg12[%c0_12, %c0_13] : memref<36x256xf32, #tpu.memory_space<vmem>>, vector<4x256xf32>
    tpu.vector_store %arg12[%c0_12, %c0_13], %11 {strides = array<i32>} : memref<36x256xf32, #tpu.memory_space<vmem>>, vector<4x256xf32>,
    %c0_14 = arith.constant 0 : index
    %c1_15 = arith.constant 1 : index
    %13 = vector.load %arg10[%c0_14, %c1_15] : memref<4x290xf32, #tpu.memory_space<vmem>>, vector<4x256xf32>
    %c4 = arith.constant 4 : index
    %c0_16 = arith.constant 0 : index
    %14 = vector.load %arg12[%c4, %c0_16] : memref<36x256xf32, #tpu.memory_space<vmem>>, vector<4x256xf32>
    tpu.vector_store %arg12[%c4, %c0_16], %13 {strides = array<i32>} : memref<36x256xf32, #tpu.memory_space<vmem>>, vector<4x256xf32>,
    %c0_17 = arith.constant 0 : index
    %c2 = arith.constant 2 : index
    %15 = vector.load %arg10[%c0_17, %c2] : memref<4x290xf32, #tpu.memory_space<vmem>>, vector<4x256xf32>
    %16 = vector.broadcast %3 : vector<1x256xf32> to vector<4x256xf32>
    %17 = arith.mulf %15, %16 : vector<4x256xf32>
    %c8 = arith.constant 8 : index
    %c0_18 = arith.constant 0 : index
    %18 = vector.load %arg12[%c8, %c0_18] : memref<36x256xf32, #tpu.memory_space<vmem>>, vector<4x256xf32>
    tpu.vector_store %arg12[%c8, %c0_18], %17 {strides = array<i32>} : memref<36x256xf32, #tpu.memory_space<vmem>>, vector<4x256xf32>,
    %c0_19 = arith.constant 0 : index
    %c16 = arith.constant 16 : index
    %19 = vector.load %arg10[%c0_19, %c16] : memref<4x290xf32, #tpu.memory_space<vmem>>, vector<4x256xf32>
    %20 = vector.broadcast %2 : vector<1x256xf32> to vector<4x256xf32>
    %21 = arith.mulf %19, %20 : vector<4x256xf32>
    %c12 = arith.constant 12 : index
    %c0_20 = arith.constant 0 : index
    %22 = vector.load %arg12[%c12, %c0_20] : memref<36x256xf32, #tpu.memory_space<vmem>>, vector<4x256xf32>
    tpu.vector_store %arg12[%c12, %c0_20], %21 {strides = array<i32>} : memref<36x256xf32, #tpu.memory_space<vmem>>, vector<4x256xf32>,
    %c0_21 = arith.constant 0 : index
    %c17_22 = arith.constant 17 : index
    %23 = vector.load %arg10[%c0_21, %c17_22] : memref<4x290xf32, #tpu.memory_space<vmem>>, vector<4x256xf32>
    %c16_23 = arith.constant 16 : index
    %c0_24 = arith.constant 0 : index
    %24 = vector.load %arg12[%c16_23, %c0_24] : memref<36x256xf32, #tpu.memory_space<vmem>>, vector<4x256xf32>
    tpu.vector_store %arg12[%c16_23, %c0_24], %23 {strides = array<i32>} : memref<36x256xf32, #tpu.memory_space<vmem>>, vector<4x256xf32>,
    %c0_25 = arith.constant 0 : index
    %c18 = arith.constant 18 : index
    %25 = vector.load %arg10[%c0_25, %c18] : memref<4x290xf32, #tpu.memory_space<vmem>>, vector<4x256xf32>
    %26 = vector.broadcast %3 : vector<1x256xf32> to vector<4x256xf32>
    %27 = arith.mulf %25, %26 : vector<4x256xf32>
    %c20 = arith.constant 20 : index
    %c0_26 = arith.constant 0 : index
    %28 = vector.load %arg12[%c20, %c0_26] : memref<36x256xf32, #tpu.memory_space<vmem>>, vector<4x256xf32>
    tpu.vector_store %arg12[%c20, %c0_26], %27 {strides = array<i32>} : memref<36x256xf32, #tpu.memory_space<vmem>>, vector<4x256xf32>,
    %c0_27 = arith.constant 0 : index
    %c32 = arith.constant 32 : index
    %29 = vector.load %arg10[%c0_27, %c32] : memref<4x290xf32, #tpu.memory_space<vmem>>, vector<4x256xf32>
    %30 = vector.broadcast %2 : vector<1x256xf32> to vector<4x256xf32>
    %31 = arith.mulf %29, %30 : vector<4x256xf32>
    %c24 = arith.constant 24 : index
    %c0_28 = arith.constant 0 : index
    %32 = vector.load %arg12[%c24, %c0_28] : memref<36x256xf32, #tpu.memory_space<vmem>>, vector<4x256xf32>
    tpu.vector_store %arg12[%c24, %c0_28], %31 {strides = array<i32>} : memref<36x256xf32, #tpu.memory_space<vmem>>, vector<4x256xf32>,
    %c0_29 = arith.constant 0 : index
    %c33 = arith.constant 33 : index
    %33 = vector.load %arg10[%c0_29, %c33] : memref<4x290xf32, #tpu.memory_space<vmem>>, vector<4x256xf32>
    %c28 = arith.constant 28 : index
    %c0_30 = arith.constant 0 : index
    %34 = vector.load %arg12[%c28, %c0_30] : memref<36x256xf32, #tpu.memory_space<vmem>>, vector<4x256xf32>
    tpu.vector_store %arg12[%c28, %c0_30], %33 {strides = array<i32>} : memref<36x256xf32, #tpu.memory_space<vmem>>, vector<4x256xf32>,
    %c0_31 = arith.constant 0 : index
    %c34 = arith.constant 34 : index
    %35 = vector.load %arg10[%c0_31, %c34] : memref<4x290xf32, #tpu.memory_space<vmem>>, vector<4x256xf32>
    %36 = vector.broadcast %3 : vector<1x256xf32> to vector<4x256xf32>
    %37 = arith.mulf %35, %36 : vector<4x256xf32>
    %c32_32 = arith.constant 32 : index
    %c0_33 = arith.constant 0 : index
    %38 = vector.load %arg12[%c32_32, %c0_33] : memref<36x256xf32, #tpu.memory_space<vmem>>, vector<4x256xf32>
    tpu.vector_store %arg12[%c32_32, %c0_33], %37 {strides = array<i32>} : memref<36x256xf32, #tpu.memory_space<vmem>>, vector<4x256xf32>,
    %c0_34 = arith.constant 0 : index
    %c0_35 = arith.constant 0 : index
    %39 = vector.load %arg12[%c0_34, %c0_35] : memref<36x256xf32, #tpu.memory_space<vmem>>, vector<36x256xf32>
    %c0_36 = arith.constant 0 : index
    %c0_37 = arith.constant 0 : index
    %40 = vector.load %arg3[%c0_36, %c0_37] : memref<4x36xf32, #tpu.memory_space<vmem>>, vector<4x36xf32>
    %cst_38 = arith.constant dense<0.000000e+00> : vector<4x256xf32>
    %41 = tpu.matmul %40, %39, %cst_38 {dimension_numbers = #tpu.dot_dimension_numbers<[1], [0], [0], [1], [0, 0, 1, 1], [], []>} : vector<4x36xf32>, vector<36x256xf32>, vector<4x256xf32> -> vector<4x256xf32>
    %c0_39 = arith.constant 0 : index
    %c0_40 = arith.constant 0 : index
    %42 = vector.load %arg4[%c0_39, %c0_40] : memref<4x1xf32, #tpu.memory_space<vmem>>, vector<4x1xf32>
    %43 = vector.broadcast %42 : vector<4x1xf32> to vector<4x256xf32>
    %44 = arith.mulf %41, %43 : vector<4x256xf32>
    %c0_41 = arith.constant 0 : index
    %c0_42 = arith.constant 0 : index
    %45 = vector.load %arg5[%c0_41, %c0_42] : memref<4x1xf32, #tpu.memory_space<vmem>>, vector<4x1xf32>
    %46 = vector.broadcast %45 : vector<4x1xf32> to vector<4x256xf32>
    %47 = arith.addf %44, %46 : vector<4x256xf32>
    %cst_43 = arith.constant 0.000000e+00 : f32
    %48 = vector.broadcast %cst_43 : f32 to vector<4x256xf32>
    %49 = arith.maximumf %47, %48 : vector<4x256xf32>
    %cst_44 = arith.constant 0.000000e+00 : f32
    %50 = vector.broadcast %cst_44 : f32 to vector<4x17xf32>
    %c0_45 = arith.constant 0 : index
    %c0_46 = arith.constant 0 : index
    %51 = vector.load %arg11[%c0_45, %c0_46] : memref<4x290xf32, #tpu.memory_space<vmem>>, vector<4x17xf32>
    tpu.vector_store %arg11[%c0_45, %c0_46], %50 {strides = array<i32>} : memref<4x290xf32, #tpu.memory_space<vmem>>, vector<4x17xf32>,
    %cst_47 = arith.constant 0.000000e+00 : f32
    %52 = vector.broadcast %cst_47 : f32 to vector<4x17xf32>
    %c0_48 = arith.constant 0 : index
    %c273_49 = arith.constant 273 : index
    %53 = vector.load %arg11[%c0_48, %c273_49] : memref<4x290xf32, #tpu.memory_space<vmem>>, vector<4x17xf32>
    tpu.vector_store %arg11[%c0_48, %c273_49], %52 {strides = array<i32>} : memref<4x290xf32, #tpu.memory_space<vmem>>, vector<4x17xf32>,
    %c0_50 = arith.constant 0 : index
    %c17_51 = arith.constant 17 : index
    %54 = vector.load %arg11[%c0_50, %c17_51] : memref<4x290xf32, #tpu.memory_space<vmem>>, vector<4x256xf32>
    tpu.vector_store %arg11[%c0_50, %c17_51], %49 {strides = array<i32>} : memref<4x290xf32, #tpu.memory_space<vmem>>, vector<4x256xf32>,
    %c0_52 = arith.constant 0 : index
    %c0_53 = arith.constant 0 : index
    %55 = vector.load %arg11[%c0_52, %c0_53] : memref<4x290xf32, #tpu.memory_space<vmem>>, vector<4x256xf32>
    %56 = vector.broadcast %2 : vector<1x256xf32> to vector<4x256xf32>
    %57 = arith.mulf %55, %56 : vector<4x256xf32>
    %c0_54 = arith.constant 0 : index
    %c0_55 = arith.constant 0 : index
    %58 = vector.load %arg13[%c0_54, %c0_55] : memref<36x256xf32, #tpu.memory_space<vmem>>, vector<4x256xf32>
    tpu.vector_store %arg13[%c0_54, %c0_55], %57 {strides = array<i32>} : memref<36x256xf32, #tpu.memory_space<vmem>>, vector<4x256xf32>,
    %c0_56 = arith.constant 0 : index
    %c1_57 = arith.constant 1 : index
    %59 = vector.load %arg11[%c0_56, %c1_57] : memref<4x290xf32, #tpu.memory_space<vmem>>, vector<4x256xf32>
    %c4_58 = arith.constant 4 : index
    %c0_59 = arith.constant 0 : index
    %60 = vector.load %arg13[%c4_58, %c0_59] : memref<36x256xf32, #tpu.memory_space<vmem>>, vector<4x256xf32>
    tpu.vector_store %arg13[%c4_58, %c0_59], %59 {strides = array<i32>} : memref<36x256xf32, #tpu.memory_space<vmem>>, vector<4x256xf32>,
    %c0_60 = arith.constant 0 : index
    %c2_61 = arith.constant 2 : index
    %61 = vector.load %arg11[%c0_60, %c2_61] : memref<4x290xf32, #tpu.memory_space<vmem>>, vector<4x256xf32>
    %62 = vector.broadcast %3 : vector<1x256xf32> to vector<4x256xf32>
    %63 = arith.mulf %61, %62 : vector<4x256xf32>
    %c8_62 = arith.constant 8 : index
    %c0_63 = arith.constant 0 : index
    %64 = vector.load %arg13[%c8_62, %c0_63] : memref<36x256xf32, #tpu.memory_space<vmem>>, vector<4x256xf32>
    tpu.vector_store %arg13[%c8_62, %c0_63], %63 {strides = array<i32>} : memref<36x256xf32, #tpu.memory_space<vmem>>, vector<4x256xf32>,
    %c0_64 = arith.constant 0 : index
    %c16_65 = arith.constant 16 : index
    %65 = vector.load %arg11[%c0_64, %c16_65] : memref<4x290xf32, #tpu.memory_space<vmem>>, vector<4x256xf32>
    %66 = vector.broadcast %2 : vector<1x256xf32> to vector<4x256xf32>
    %67 = arith.mulf %65, %66 : vector<4x256xf32>
    %c12_66 = arith.constant 12 : index
    %c0_67 = arith.constant 0 : index
    %68 = vector.load %arg13[%c12_66, %c0_67] : memref<36x256xf32, #tpu.memory_space<vmem>>, vector<4x256xf32>
    tpu.vector_store %arg13[%c12_66, %c0_67], %67 {strides = array<i32>} : memref<36x256xf32, #tpu.memory_space<vmem>>, vector<4x256xf32>,
    %c0_68 = arith.constant 0 : index
    %c17_69 = arith.constant 17 : index
    %69 = vector.load %arg11[%c0_68, %c17_69] : memref<4x290xf32, #tpu.memory_space<vmem>>, vector<4x256xf32>
    %c16_70 = arith.constant 16 : index
    %c0_71 = arith.constant 0 : index
    %70 = vector.load %arg13[%c16_70, %c0_71] : memref<36x256xf32, #tpu.memory_space<vmem>>, vector<4x256xf32>
    tpu.vector_store %arg13[%c16_70, %c0_71], %69 {strides = array<i32>} : memref<36x256xf32, #tpu.memory_space<vmem>>, vector<4x256xf32>,
    %c0_72 = arith.constant 0 : index
    %c18_73 = arith.constant 18 : index
    %71 = vector.load %arg11[%c0_72, %c18_73] : memref<4x290xf32, #tpu.memory_space<vmem>>, vector<4x256xf32>
    %72 = vector.broadcast %3 : vector<1x256xf32> to vector<4x256xf32>
    %73 = arith.mulf %71, %72 : vector<4x256xf32>
    %c20_74 = arith.constant 20 : index
    %c0_75 = arith.constant 0 : index
    %74 = vector.load %arg13[%c20_74, %c0_75] : memref<36x256xf32, #tpu.memory_space<vmem>>, vector<4x256xf32>
    tpu.vector_store %arg13[%c20_74, %c0_75], %73 {strides = array<i32>} : memref<36x256xf32, #tpu.memory_space<vmem>>, vector<4x256xf32>,
    %c0_76 = arith.constant 0 : index
    %c32_77 = arith.constant 32 : index
    %75 = vector.load %arg11[%c0_76, %c32_77] : memref<4x290xf32, #tpu.memory_space<vmem>>, vector<4x256xf32>
    %76 = vector.broadcast %2 : vector<1x256xf32> to vector<4x256xf32>
    %77 = arith.mulf %75, %76 : vector<4x256xf32>
    %c24_78 = arith.constant 24 : index
    %c0_79 = arith.constant 0 : index
    %78 = vector.load %arg13[%c24_78, %c0_79] : memref<36x256xf32, #tpu.memory_space<vmem>>, vector<4x256xf32>
    tpu.vector_store %arg13[%c24_78, %c0_79], %77 {strides = array<i32>} : memref<36x256xf32, #tpu.memory_space<vmem>>, vector<4x256xf32>,
    %c0_80 = arith.constant 0 : index
    %c33_81 = arith.constant 33 : index
    %79 = vector.load %arg11[%c0_80, %c33_81] : memref<4x290xf32, #tpu.memory_space<vmem>>, vector<4x256xf32>
    %c28_82 = arith.constant 28 : index
    %c0_83 = arith.constant 0 : index
    %80 = vector.load %arg13[%c28_82, %c0_83] : memref<36x256xf32, #tpu.memory_space<vmem>>, vector<4x256xf32>
    tpu.vector_store %arg13[%c28_82, %c0_83], %79 {strides = array<i32>} : memref<36x256xf32, #tpu.memory_space<vmem>>, vector<4x256xf32>,
    %c0_84 = arith.constant 0 : index
    %c34_85 = arith.constant 34 : index
    %81 = vector.load %arg11[%c0_84, %c34_85] : memref<4x290xf32, #tpu.memory_space<vmem>>, vector<4x256xf32>
    %82 = vector.broadcast %3 : vector<1x256xf32> to vector<4x256xf32>
    %83 = arith.mulf %81, %82 : vector<4x256xf32>
    %c32_86 = arith.constant 32 : index
    %c0_87 = arith.constant 0 : index
    %84 = vector.load %arg13[%c32_86, %c0_87] : memref<36x256xf32, #tpu.memory_space<vmem>>, vector<4x256xf32>
    tpu.vector_store %arg13[%c32_86, %c0_87], %83 {strides = array<i32>} : memref<36x256xf32, #tpu.memory_space<vmem>>, vector<4x256xf32>,
    %c0_88 = arith.constant 0 : index
    %c0_89 = arith.constant 0 : index
    %85 = vector.load %arg13[%c0_88, %c0_89] : memref<36x256xf32, #tpu.memory_space<vmem>>, vector<36x256xf32>
    %c0_90 = arith.constant 0 : index
    %c0_91 = arith.constant 0 : index
    %86 = vector.load %arg6[%c0_90, %c0_91] : memref<4x36xf32, #tpu.memory_space<vmem>>, vector<4x36xf32>
    %cst_92 = arith.constant dense<0.000000e+00> : vector<4x256xf32>
    %87 = tpu.matmul %86, %85, %cst_92 {dimension_numbers = #tpu.dot_dimension_numbers<[1], [0], [0], [1], [0, 0, 1, 1], [], []>} : vector<4x36xf32>, vector<36x256xf32>, vector<4x256xf32> -> vector<4x256xf32>
    %c0_93 = arith.constant 0 : index
    %c0_94 = arith.constant 0 : index
    %88 = vector.load %arg7[%c0_93, %c0_94] : memref<4x1xf32, #tpu.memory_space<vmem>>, vector<4x1xf32>
    %89 = vector.broadcast %88 : vector<4x1xf32> to vector<4x256xf32>
    %90 = arith.mulf %87, %89 : vector<4x256xf32>
    %c0_95 = arith.constant 0 : index
    %c0_96 = arith.constant 0 : index
    %91 = vector.load %arg8[%c0_95, %c0_96] : memref<4x1xf32, #tpu.memory_space<vmem>>, vector<4x1xf32>
    %92 = vector.broadcast %91 : vector<4x1xf32> to vector<4x256xf32>
    %93 = arith.addf %90, %92 : vector<4x256xf32>
    %cst_97 = arith.constant dense<0.000000e+00> : vector<4xf32>
    %94 = vector.multi_reduction <add>, %93, %cst_97 [1] : vector<4x256xf32> to vector<4xf32>
    %95 = vector.shape_cast %94 : vector<4xf32> to vector<4x1xf32>
    %cst_98 = arith.constant 2.560000e+02 : f32
    %96 = vector.broadcast %cst_98 : f32 to vector<4x1xf32>
    %97 = arith.divf %95, %96 : vector<4x1xf32>
    %98 = vector.broadcast %97 : vector<4x1xf32> to vector<4x256xf32>
    %99 = arith.subf %93, %98 : vector<4x256xf32>
    %100 = arith.mulf %99, %99 : vector<4x256xf32>
    %cst_99 = arith.constant dense<0.000000e+00> : vector<4xf32>
    %101 = vector.multi_reduction <add>, %100, %cst_99 [1] : vector<4x256xf32> to vector<4xf32>
    %102 = vector.shape_cast %101 : vector<4xf32> to vector<4x1xf32>
    %cst_100 = arith.constant 0.00392156886 : f32
    %103 = vector.broadcast %cst_100 : f32 to vector<4x1xf32>
    %104 = arith.mulf %102, %103 : vector<4x1xf32>
    %cst_101 = arith.constant 9.99999974E-6 : f32
    %105 = vector.broadcast %cst_101 : f32 to vector<4x1xf32>
    %106 = arith.addf %104, %105 : vector<4x1xf32>
    %cst_102 = arith.constant 4.000000e+00 : f32
    %107 = vector.broadcast %cst_102 : f32 to vector<4x1xf32>
    %108 = arith.mulf %107, %106 : vector<4x1xf32>
    %109 = tpu.reciprocal %108 : vector<4x1xf32> -> vector<4x1xf32>
    %110 = vector.broadcast %109 : vector<4x1xf32> to vector<4x256xf32>
    %111 = arith.mulf %100, %110 : vector<4x256xf32>
    %cst_103 = arith.constant 5.000000e-01 : f32
    %112 = vector.broadcast %cst_103 : f32 to vector<4x256xf32>
    %113 = arith.addf %111, %112 : vector<4x256xf32>
    %cst_104 = arith.constant 0.000000e+00 : f32
    %114 = vector.broadcast %cst_104 : f32 to vector<4x256xf32>
    %115 = arith.subf %114, %113 : vector<4x256xf32>
    %116 = math.exp %115 : vector<4x256xf32>
    %cst_105 = arith.constant 1.000000e+00 : f32
    %117 = vector.broadcast %cst_105 : f32 to vector<4x256xf32>
    %118 = arith.addf %117, %116 : vector<4x256xf32>
    %119 = tpu.reciprocal %118 : vector<4x256xf32> -> vector<4x256xf32>
    %120 = arith.mulf %93, %119 : vector<4x256xf32>
    %121 = arith.addf %120, %1 : vector<4x256xf32>
    %cst_106 = arith.constant 0.000000e+00 : f32
    %122 = vector.broadcast %cst_106 : f32 to vector<4x256xf32>
    %123 = arith.maximumf %121, %122 : vector<4x256xf32>
    %c0_107 = arith.constant 0 : index
    %c0_108 = arith.constant 0 : index
    %c0_109 = arith.constant 0 : index
    %124 = vector.load %arg9[%c0_107, %c0_108, %c0_109] : memref<1x4x256xf32, #tpu.memory_space<vmem>>, vector<1x4x256xf32>
    %125 = vector.shape_cast %124 : vector<1x4x256xf32> to vector<4x256xf32>
    %126 = vector.shape_cast %123 : vector<4x256xf32> to vector<1x4x256xf32>
    tpu.vector_store %arg9[%c0_107, %c0_108, %c0_109], %126 {strides = array<i32>} : memref<1x4x256xf32, #tpu.memory_space<vmem>>, vector<1x4x256xf32>,
    return
  }
  func.func @transform_0(%arg0: i32) -> (i32, i32, i32) {
    %c0_i32 = arith.constant 0 : i32
    %c0_i32_0 = arith.constant 0 : i32
    %c0_i32_1 = arith.constant 0 : i32
    return %arg0, %c0_i32, %c0_i32_0 : i32, i32, i32
  }
  func.func @transform_1(%arg0: i32) -> (i32, i32) {
    %c0_i32 = arith.constant 0 : i32
    %c0_i32_0 = arith.constant 0 : i32
    %c0_i32_1 = arith.constant 0 : i32
    return %c0_i32, %c0_i32_0 : i32, i32
  }
  func.func @transform_2(%arg0: i32) -> (i32, i32) {
    %c0_i32 = arith.constant 0 : i32
    %c0_i32_0 = arith.constant 0 : i32
    %c0_i32_1 = arith.constant 0 : i32
    return %c0_i32, %c0_i32_0 : i32, i32
  }
  func.func @transform_3(%arg0: i32) -> (i32, i32) {
    %c0_i32 = arith.constant 0 : i32
    %c0_i32_0 = arith.constant 0 : i32
    %c0_i32_1 = arith.constant 0 : i32
    return %c0_i32, %c0_i32_0 : i32, i32
  }
  func.func @transform_4(%arg0: i32) -> (i32, i32) {
    %c0_i32 = arith.constant 0 : i32
    %c0_i32_0 = arith.constant 0 : i32
    %c0_i32_1 = arith.constant 0 : i32
    return %c0_i32, %c0_i32_0 : i32, i32
  }
  func.func @transform_5(%arg0: i32) -> (i32, i32) {
    %c0_i32 = arith.constant 0 : i32
    %c0_i32_0 = arith.constant 0 : i32
    %c0_i32_1 = arith.constant 0 : i32
    return %c0_i32, %c0_i32_0 : i32, i32
  }
  func.func @transform_6(%arg0: i32) -> (i32, i32) {
    %c0_i32 = arith.constant 0 : i32
    %c0_i32_0 = arith.constant 0 : i32
    %c0_i32_1 = arith.constant 0 : i32
    return %c0_i32, %c0_i32_0 : i32, i32
  }
  func.func @transform_7(%arg0: i32) -> (i32, i32) {
    %c0_i32 = arith.constant 0 : i32
    %c0_i32_0 = arith.constant 0 : i32
    %c0_i32_1 = arith.constant 0 : i32
    return %c0_i32, %c0_i32_0 : i32, i32
  }
  func.func @transform_8(%arg0: i32) -> (i32, i32, i32) {
    %c0_i32 = arith.constant 0 : i32
    %c0_i32_0 = arith.constant 0 : i32
    %c0_i32_1 = arith.constant 0 : i32
    return %arg0, %c0_i32, %c0_i32_0 : i32, i32, i32
  }
}

</mosaic_0001>

<bundles_post_ra>
// kernel: tpu_custom_call.1
= control target key start
LH: loop header
LB: loop body
LE: loop exit
PB: predicated region body
PF: predicated region fallthrough
CT: control target
= control target key end

     0   :  { %13 = vsyncpa [#allocation7], 0  ;;  %s1647_s0 = inlined_call_operand.vmem [shape: f32[2,4,256], index: 0, kind: input, shape index: {}]   ;;  %s1648_s1 = inlined_call_operand.vmem [shape: f32[2,256], index: 1, kind: input, shape index: {}]   ;;  %s1649_s2 = inlined_call_operand.hbm [shape: f32[4,36], index: 2, kind: input, shape index: {}]   ;;  %s1650_s3 = inlined_call_operand.vmem [shape: f32[4,1], index: 3, kind: input, shape index: {}]   ;;  %s1651_s4 = inlined_call_operand.vmem [shape: f32[4,1], index: 4, kind: input, shape index: {}]   ;;  %s1652_s5 = inlined_call_operand.vmem [shape: f32[4,36], index: 5, kind: input, shape index: {}]   ;;  %s1653_s6 = inlined_call_operand.vmem [shape: f32[4,1], index: 6, kind: input, shape index: {}]   ;;  %s1654_s7 = inlined_call_operand.vmem [shape: f32[4,1], index: 7, kind: input, shape index: {}]   ;;  %s1655_s8 = inlined_call_operand.hbm [shape: f32[2,4,256], index: 8, kind: output, shape index: {}]  }
   0x1   :  { %14 = vsyncpa [#allocation8], 0 }
   0x2   :  { %16 = vsyncpa [#allocation8 + $0x1], 0  ;;  %s1343_s27 = smov 0   ;;  %s1345_s28 = smov 0  }
   0x3   :  { %s1347_s29 = smov 0   ;;  %s1349_s30 = smov 0  }
   0x4 LB: > { %s1364_s9 = sadd.s32 4294967295, %s1278_s30   ;;  %s1080_s10 = sadd.s32 4294967294, %s1278_s30   ;;  %s1278_s30 = sphi %s1349_s30, %s1665_s30   ;;  %s1274_s29 = sphi %s1347_s29, %s1664_s29   ;;  %s1270_s28 = sphi %s1345_s28, %s1663_s28   ;;  %s1266_s27 = sphi %s1343_s27, %s1662_s27  }
   0x5   : > { %s1368_s11 = sadd.s32 1, %s1278_s30   ;;  %s202_s12 = sadd.s32 1, %s1274_s29 }
   0x6   : > { %s199_s13 = ssub.s32 %s1278_s30, %s1368_s11  ;;  %p212_p0 = scmp.ne.s32.totalorder %s1274_s29, %s1270_s28 }
   0x7   : > { %p200_p1 = scmp.eq.s32.totalorder %s199_s13, 0  ;;  %p213_p2 = scmp.eq.s32.totalorder %s1364_s9, 1 }
   0x8   : > { %p218_p3 = scmp.ne.s32.totalorder %s1270_s28, %s1266_s27  ;;  %p219_p4 = scmp.eq.s32.totalorder %s1080_s10, 1 }
   0x9   : > { %s1379_s14 = scalar_select %p200_p1, %s1274_s29, %s202_s12  }
   0xa   : > { %p1381_p5 = por %p213_p2, %p212_p0  ;;  %p1385_p6 = por %p219_p4, %p218_p3 }
   0xb   : > { %p1081_p7 = scmp.ge.s32.totalorder %s1278_s30, 1  ;;  %p226_p8 = scmp.lt.s32.totalorder %s1278_s30, 3 }
   0xc   : > { %s1657_s16 = scalar_select %p1385_p6, 1, 0 }
   0xd   : > { %p1117_p9 = scmp.eq.s32.totalorder %s1364_s9, 0  ;;  %p1392_p10 = pnand %p1081_p7, %p226_p8 }
   0xe   : > { %s1280_s18 = smov [#allocation6]  }
   0xf   : > { %s242_s19 = sshll.u32 %s1280_s18, 4  ;;  %p1109_p11 = pneg %p1392_p10  ;;  %s243_s19 = int_to_ptr.vmem [resolvable:$true] %s242_s19 }
  0x10   : > { %s1199_s20 = scalar_lea.vmem %s243_s19, 64  ;;  %p1207_p3 = scmp.lt.s32.totalorder %s243_s19, %s243_s19 }
  0x11   : > { %p1110_p12 = pnand %p1117_p9, %p1109_p11  ;;  %p1200_p0 = scmp.ne.s32.totalorder %s243_s19, %s1199_s20 }
  0x12   : > { %p1208_p4 = scmp.lt.s32.totalorder %s1199_s20, %s1199_s20 }
  0x13   : > { %p1190_p13 = pneg %p1110_p12 }
  0x14   : > { %p1209_p6 = por %p1208_p4, %p1207_p3 }
  0x15   : > { %p1202_p1 = pnand %p1200_p0, %p1190_p13 }
  0x17   : > { %p1203_p2 = pneg %p1202_p1 }
  0x19   : > { %p1210_p7 = pnand %p1209_p6, %p1203_p2 }
  0x1b   : > { %1213 = shalt.err (!%p1210_p7)
}
  0x1c   : > { %1112 = dma.hbm_to_vmem [thread:$0]  (!%p1110_p12), %s1649_s2, 64, %s243_s19, [#allocation7]  }
  0x1d   : > { %278 = sbr.rel (%p1392_p10) target bundleno = 1402 (0x57a), region = 52 }
  0x22   : > { %1257 = dma.done.wait (%p1117_p9), [#allocation7], 64  }
  0x23   : > { %1259 = vsyncadd (%p1117_p9), [#allocation7], 4294967232  ;;  %p312_p8 = scmp.lt.s32.totalorder %s1364_s9, 1  ;;  %v340_v0 = vlaneseq  ;;  %vm321_vm0 = vcmask 134144   ;;  %v1281_v1 = vmov 0.0   ;;  %vm323_vm1 = vcmask 273544  }
  0x24   : > { %322 = vst.msk [vmem:[#allocation2] sm:$0xf] %vm321_vm0, %v1281_v1  ;;  %670 = vst.msk [vmem:[#allocation3] sm:$0xf] %vm321_vm0, %v1281_v1  ;;  %645 = vmatprep.mubr.f32.mxu0 %v1281_v1  ;;  %924 = vmatprep.mubr.f32.mxu1 %v1281_v1  ;;  %s1282_s17 = smov 17   ;;  %s1283_s20 = smov 32  }
  0x25   : > { %s313_s23 = scalar_select %p312_p8, %s1364_s9, 1  ;;  %v341_v2 = vshrl.u32 %v340_v0, 7  ;;  %324 = vst.msk [vmem:[#allocation2 + $0x8] sm:$0xf] %vm323_vm1, %v1281_v1  ;;  %671 = vst.msk [vmem:[#allocation3 + $0x8] sm:$0xf] %vm323_vm1, %v1281_v1 }
  0x26   : > { %v318_v6 = vld [vmem:[%s1648_s1] ss:$2 sm:$0x3]  ;;  %v1089_v9 = vld [vmem:[%s1648_s1 + $0x1] ss:$2 sm:$0x3] }
  0x27   : > { %s1101_s24 = sshll.u32 %s313_s23, 3  ;;  %v342_v3 = vsub.s32 0, %v341_v2  ;;  %v346_v4 = vsub.s32 1, %v341_v2  ;;  %s1284_s21 = smov 34   ;;  %vm333_vm2 = vcmask 1043592   ;;  %vm334_vm3 = vcmask 1047556  }
  0x28   : > { %s316_s10 = scalar_lea.vmem %s1647_s0, %s1101_s24  ;;  %s1285_s22 = smov 18   ;;  %vm329_vm4 = vcmask 138240   ;;  %vm1430_vm5 = vmor %vm334_vm3, %vm333_vm2  ;;  %vm537_vm6 = vcmask 277504   ;;  %vm491_vm7 = vcmask 261120   ;;  %vm463_vm8 = vcmask 146432  }
  0x29   : > { %v1416_v5 = vld [vmem:[%s316_s10] sm:$0xff]  ;;  %v343_v7 = vrot.slane %v318_v6, %v342_v3  ;;  %v347_v8 = vrot.slane %v318_v6, %v346_v4  ;;  %v381_v10 = vrot.slane %v1089_v9, %v342_v3  ;;  %v385_v11 = vrot.slane %v1089_v9, %v346_v4  ;;  %s1286_s23 = smov 2   ;;  %s1287_s24 = smov 16  }
  0x2a   : > { %326 = vrot.lane.b32.xlu0 %v1416_v5, %s1282_s17  ;;  %s1288_s25 = smov 111   ;;  %s1289_s26 = smov 95   ;;  %vm417_vm9 = vcmask 130048   ;;  %vm390_vm10 = vcmask 15360   ;;  %v1296_v63 = vmov 0   ;;  %vm525_vm11 = vcmask 777216  }
  0x2b   : > { %v1426_v12 = vcombine.low %v343_v7, %v347_v8  ;;  %v386_v13 = vcombine.low %v381_v10, %v385_v11  ;;  %s1290_s10 = smov 96   ;;  %s1291_s12 = smov 127   ;;  %1169 = vset.pattern.permute.xlu0 %v1296_v63  ;;  %1170 = vset.pattern.permute.xlu1 %v1296_v63  ;;  %v652_v0 = vld [vmem:[%s1650_s3] sm:$0xf]  ;;  %vm451_vm12 = vcmask 908288   ;;  %vm479_vm13 = vcmask 900096  }
  0x2c   : > { %s1292_s13 = smov 126   ;;  %s1293_s18 = smov 94   ;;  %v660_v1 = vld [vmem:[%s1651_s4] sm:$0xf]  ;;  %vm433_vm14 = vcmask 916480   ;;  %vm552_vm15 = vcmask 769024  }
  0x2d   : > { %488 = vrot.lane.b32.xlu1 %v1426_v12, %s1283_s20  ;;  %s1294_s19 = smov 110   ;;  %s1295_s20 = smov 112   ;;  %vm506_vm1 = vcmask 785408   ;;  %vm405_vm2 = vcmask 1031168   ;;  %vm574_vm3 = vcmask 1043456  }
  0x2e   : > { %534 = vrot.lane.b32.xlu0 %v386_v13, %s1284_s21 }
  0x31   : > { %460 = vrot.lane.b32.xlu1 %v386_v13, %s1285_s22 }
  0x32   : > { %387 = vrot.lane.b32.xlu0 %v386_v13, %s1286_s23 }
  0x35   : > { %414 = vrot.lane.b32.xlu1 %v1426_v12, %s1287_s24 }
  0x9c   : > { %v327_v14 = vpop.permute.xlu0 %326 }
  0x9d   : > { %v328_v16 = vrot.slane %v327_v14, 4 }
  0x9f   : > { %v330_v17 = vsel %vm329_vm4, %v328_v16, %v327_v14  ;;  %337 = vst.msk [vmem:[#allocation2 + $0x8] sm:$0xf] %vm321_vm0, %v328_v16  ;;  %v489_v18 = vpop.permute.xlu1 %488 }
  0xa0   : > { %336 = vst.msk [vmem:[#allocation2] sm:$0xff] %vm1430_vm5, %v330_v17  ;;  %v535_v19 = vpop.permute.xlu0 %534  ;;  %v1438_v20 = vrot.slane %v489_v18, 4 }
  0xa1   : > { %v1453_v29 = vrot.slane %v535_v19, 4 }
  0xa2   : > { %v1464_v37 = vsel %vm491_vm7, %v1438_v20, %v489_v18  ;;  %vm570_vm7 = vcmask 293888  }
  0xa3   : > { %v461_v33 = vpop.permute.xlu1 %460  ;;  %v1460_v35 = vsel %vm537_vm6, %v1453_v29, %v535_v19  ;;  %vm368_vm6 = vcmask 1039360  }
  0xa4   : > { %v388_v25 = vpop.permute.xlu0 %387  ;;  %v1470_v39 = vrot.slane %v461_v33, 4 }
  0xa5   : > { %v1451_v27 = vrot.slane %v388_v25, 4 }
  0xa6   : > { %v441_v21 = vld [vmem:[#allocation2 + $0x8] sm:$0xf]  ;;  %v1484_v47 = vsel %vm463_vm8, %v1470_v39, %v461_v33 }
  0xa7   : > { %v487_v22 = vld [vmem:[#allocation2 + $0x8] sm:$0xf]  ;;  %v1440_v23 = vld [vmem:[#allocation2] sm:$0xff]  ;;  %449 = vrot.lane.b32.xlu0 %v441_v21, %s1288_s25  ;;  %v415_v41 = vpop.permute.xlu1 %414  ;;  %v1499_v55 = vsel %vm390_vm10, %v1451_v27, %v388_v25 }
  0xa8   : > { %521 = vrot.lane.b32.xlu1 %v1440_v23, %s1289_s26  ;;  %v496_v24 = vmul.f32 %v1438_v20, %v487_v22  ;;  %v350_v26 = vmul.f32 %v1426_v12, %v1440_v23  ;;  %v1172_v28 = vld [vmem:[#allocation2 + $0x8] ss:$0 sps:$4 sm:$0xff]   ;;  %v541_v38 = vmul.f32 %v1460_v35, %v1440_v23  ;;  %v495_v40 = vmul.f32 %v1464_v37, %v1440_v23 }
  0xa9   : > { %v376_v30 = vld [vmem:[#allocation2 + $0x8] sm:$0xf]  ;;  %v1476_v43 = vrot.slane %v415_v41, 4  ;;  %v517_v44 = vcombine.low %v1440_v23, %v1440_v23  ;;  %v444_v46 = vcombine.high %v1440_v23, %v1440_v23  ;;  %v467_v51 = vmul.f32 %v1484_v47, %v1440_v23 }
  0xaa   : > { %v352_v31 = vcombine.high %v350_v26, %v350_v26  ;;  %354 = vst [vmem:[#allocation4 + $0x30] sm:$0xf] %v350_v26  ;;  %v533_v32 = vld [vmem:[#allocation2 + $0x8] sm:$0xf]  ;;  %v395_v34 = vmul.f32 %v1451_v27, %v376_v30  ;;  %v545_v56 = vcombine.high %v541_v38, %v541_v38  ;;  %v394_v57 = vmul.f32 %v1499_v55, %v1440_v23 }
  0xab   : > { %504 = vrot.lane.b32.xlu0 %v496_v24, %s1290_s10  ;;  %v542_v36 = vmul.f32 %v1453_v29, %v533_v32  ;;  %v459_v42 = vld [vmem:[#allocation2 + $0x8] sm:$0xf]  ;;  %v1492_v52 = vsel %vm417_vm9, %v1476_v43, %v415_v41  ;;  %v471_v58 = vcombine.low %v467_v51, %v467_v51  ;;  %v499_v59 = vcombine.high %v495_v40, %v495_v40 }
  0xac   : > { %445 = vrot.lane.b32.xlu1 %v1440_v23, %s1288_s25  ;;  %355 = vst [vmem:[#allocation4] sm:$0xf] %v352_v31  ;;  %v468_v45 = vmul.f32 %v1470_v39, %v459_v42  ;;  %v413_v48 = vld [vmem:[#allocation2 + $0x8] sm:$0xf]  ;;  %v421_v54 = vmul.f32 %v1492_v52, %v1440_v23  ;;  %v398_v61 = vcombine.high %v394_v57, %v394_v57 }
  0xad   : > { %v422_v50 = vmul.f32 %v1476_v43, %v413_v48  ;;  %v1173_v62 = vld [vmem:[#allocation2 + $0x8] ss:$0 sps:$4 sm:$0xff]  }
  0xae   : > { %v472_v49 = vcombine.low %v468_v45, %v468_v45  ;;  %v425_v60 = vcombine.low %v421_v54, %v421_v54 }
  0xaf   : > { %523 = vrot.lane.b32.xlu0 %v1172_v28, %s1289_s26  ;;  %v426_v53 = vcombine.low %v422_v50, %v422_v50 }
  0xb0   : > { %364 = vrot.lane.b32.xlu1 %v1440_v23, %s1291_s12 }
  0xb3   : > { %403 = vrot.lane.b32.xlu0 %v395_v34, %s1292_s13 }
  0xb4   : > { %550 = vrot.lane.b32.xlu1 %v542_v36, %s1293_s18 }
  0xb7   : > { %546 = vrot.lane.b32.xlu0 %v541_v38, %s1293_s18 }
  0xb8   : > { %500 = vrot.lane.b32.xlu1 %v495_v40, %s1290_s10 }
  0xbb   : > { %519 = vrot.lane.b32.xlu0 %v517_v44, %s1289_s26 }
  0xbc   : > { %447 = vrot.lane.b32.xlu1 %v444_v46, %s1288_s25 }
  0xbf   : > { %477 = vrot.lane.b32.xlu0 %v472_v49, %s1294_s19 }
  0xc0   : > { %475 = vrot.lane.b32.xlu1 %v467_v51, %s1294_s19 }
  0xc3   : > { %431 = vrot.lane.b32.xlu0 %v426_v53, %s1295_s20 }
  0xc4   : > { %429 = vrot.lane.b32.xlu1 %v421_v54, %s1295_s20 }
  0xc7   : > { %548 = vrot.lane.b32.xlu0 %v545_v56, %s1293_s18 }
  0xc8   : > { %399 = vrot.lane.b32.xlu1 %v394_v57, %s1292_s13 }
  0xcb   : > { %473 = vrot.lane.b32.xlu0 %v471_v58, %s1294_s19 }
  0xcc   : > { %502 = vrot.lane.b32.xlu1 %v499_v59, %s1290_s10 }
  0xcf   : > { %427 = vrot.lane.b32.xlu0 %v425_v60, %s1295_s20 }
  0xd0   : > { %401 = vrot.lane.b32.xlu1 %v398_v61, %s1292_s13 }
  0xd3   : > { %366 = vrot.lane.b32.xlu0 %v1173_v62, %s1291_s12 }
  0xd4   : > { %362 = vrot.lane.b32.xlu1 %v517_v44, %s1291_s12 }
  0xd7   : > { %655 = vperm.xlu0 %1169, %v652_v0   ;;  %v569_v0 = vld [vmem:[#allocation6] sm:$0xf] }
  0xd8   : > { %663 = vperm.xlu1 %1170, %v660_v1  }
 0x119   : > { %v450_v2 = vpop.permute.xlu0 %449 }
 0x11a   : > { %v522_v3 = vpop.permute.xlu1 %521 }
 0x11d   : > { %v505_v4 = vpop.permute.xlu0 %504 }
 0x11e   : > { %v446_v6 = vpop.permute.xlu1 %445 }
 0x121   : > { %v524_v7 = vpop.permute.xlu0 %523 }
 0x122   : > { %v527_v8 = vsel %vm525_vm11, %v522_v3, %v524_v7  ;;  %v365_v9 = vpop.permute.xlu1 %364 }
 0x123   : > { %531 = vst [vmem:[#allocation4 + $0x20] sm:$0xf0] %v527_v8 }
 0x125   : > { %v404_v10 = vpop.permute.xlu0 %403 }
 0x126   : > { %v551_v11 = vpop.permute.xlu1 %550 }
 0x129   : > { %v547_v13 = vpop.permute.xlu0 %546 }
 0x12a   : > { %v501_v14 = vpop.permute.xlu1 %500 }
 0x12d   : > { %v520_v16 = vpop.permute.xlu0 %519 }
 0x12e   : > { %v526_v17 = vsel %vm525_vm11, %v520_v16, %v522_v3  ;;  %v448_v18 = vpop.permute.xlu1 %447 }
 0x12f   : > { %530 = vst [vmem:[#allocation4 + $0x8] sm:$0xf0] %v526_v17  ;;  %v452_v19 = vsel %vm451_vm12, %v446_v6, %v448_v18  ;;  %v453_v21 = vsel %vm451_vm12, %v448_v18, %v450_v2 }
 0x130   : > { %456 = vst [vmem:[#allocation4 + $0x48] sm:$0xf] %v452_v19  ;;  %457 = vst [vmem:[#allocation4 + $0x28] sm:$0xf] %v453_v21 }
 0x131   : > { %v478_v22 = vpop.permute.xlu0 %477 }
 0x132   : > { %v476_v23 = vpop.permute.xlu1 %475 }
 0x133   : > { %v481_v24 = vsel %vm479_vm13, %v476_v23, %v478_v22 }
 0x134   : > { %485 = vst [vmem:[#allocation4 + $0x28] sm:$0xf0] %v481_v24 }
 0x135   : > { %v432_v25 = vpop.permute.xlu0 %431 }
 0x136   : > { %v430_v26 = vpop.permute.xlu1 %429 }
 0x137   : > { %v435_v28 = vsel %vm433_vm14, %v430_v26, %v432_v25 }
 0x138   : > { %439 = vst [vmem:[#allocation4 + $0x10] sm:$0xf0] %v435_v28 }
 0x139   : > { %v549_v30 = vpop.permute.xlu0 %548 }
 0x13a   : > { %v553_v31 = vsel %vm552_vm15, %v547_v13, %v549_v30  ;;  %v554_v32 = vsel %vm552_vm15, %v549_v30, %v551_v11  ;;  %v400_v33 = vpop.permute.xlu1 %399 }
 0x13b   : > { %557 = vst [vmem:[#allocation4 + $0x40] sm:$0xf] %v553_v31  ;;  %558 = vst [vmem:[#allocation4 + $0x38] sm:$0xf] %v554_v32  ;;  %v564_v59 = vld [vmem:[#allocation4 + $0x28] sm:$0xff] }
 0x13d   : > { %v474_v34 = vpop.permute.xlu0 %473 }
 0x13e   : > { %v480_v36 = vsel %vm479_vm13, %v474_v34, %v476_v23  ;;  %v503_v38 = vpop.permute.xlu1 %502 }
 0x13f   : > { %484 = vst [vmem:[#allocation4 + $0x48] sm:$0xf0] %v480_v36  ;;  %v507_v40 = vsel %vm506_vm1, %v501_v14, %v503_v38  ;;  %v508_v41 = vsel %vm506_vm1, %v503_v38, %v505_v4 }
 0x140   : > { %511 = vst [vmem:[#allocation4 + $0x8] sm:$0xf] %v507_v40  ;;  %512 = vst [vmem:[#allocation4 + $0x20] sm:$0xf] %v508_v41 }
 0x141   : > { %v428_v42 = vpop.permute.xlu0 %427 }
 0x142   : > { %v434_v44 = vsel %vm433_vm14, %v428_v42, %v430_v26  ;;  %v402_v45 = vpop.permute.xlu1 %401  ;;  %v568_v46 = vld [vmem:[#allocation4 + $0x38] sm:$0xf]  ;;  %v567_v48 = vld [vmem:[#allocation4 + $0x40] sm:$0xf] }
 0x143   : > { %438 = vst [vmem:[#allocation4 + $0x18] sm:$0xf0] %v434_v44  ;;  %v406_v49 = vsel %vm405_vm2, %v400_v33, %v402_v45  ;;  %v407_v50 = vsel %vm405_vm2, %v402_v45, %v404_v10  ;;  %1090 = vmatprep.subr.msk.mxu0 %vm574_vm3, %v568_v46  ;;  %v939_v45 = vld [vmem:[%s1654_s7] sm:$0xf] }
 0x144   : > { %410 = vst [vmem:[#allocation4 + $0x18] sm:$0xf] %v406_v49  ;;  %411 = vst [vmem:[#allocation4 + $0x10] sm:$0xf] %v407_v50  ;;  %1091 = vmatpush1.msk.msra.mxu0 %vm574_vm3, %v567_v48 }
 0x145   : > { %v367_v51 = vpop.permute.xlu0 %366 }
 0x146   : > { %v370_v53 = vsel %vm368_vm6, %v365_v9, %v367_v51  ;;  %v363_v54 = vpop.permute.xlu1 %362  ;;  %v563_v60 = vld [vmem:[#allocation4 + $0x48] sm:$0xff] }
 0x147   : > { %374 = vst [vmem:[#allocation4] sm:$0xf0] %v370_v53  ;;  %v369_v56 = vsel %vm368_vm6, %v363_v54, %v365_v9  ;;  %v566_v57 = vld [vmem:[#allocation4 + $0x20] sm:$0xff]  ;;  %v565_v58 = vld [vmem:[#allocation4 + $0x8] sm:$0xff] }
 0x148   : > { %373 = vst [vmem:[#allocation4 + $0x30] sm:$0xf0] %v369_v56  ;;  %605 = vmatprep.subr.mxu0 %v566_v57 }
 0x149   : > { %606 = vmatpush1.msra.mxu0 %v565_v58 }
 0x14a   : > { %607 = vmatprep.subr.mxu0 %v564_v59 }
 0x14b   : > { %608 = vmatpush1.msra.mxu0 %v563_v60  ;;  %v562_v61 = vld [vmem:[#allocation4 + $0x10] sm:$0xff]  ;;  %v561_v62 = vld [vmem:[#allocation4 + $0x18] sm:$0xff] }
 0x14c   : > { %609 = vmatprep.subr.mxu0 %v562_v61 }
 0x14d   : > { %610 = vmatpush1.msra.mxu0 %v561_v62 }
 0x14e   : > { %v560_v63 = vld [vmem:[#allocation4] sm:$0xff] }
 0x14f   : > { %611 = vmatprep.subr.mxu0 %v560_v63  ;;  %v559_v1 = vld [vmem:[#allocation4 + $0x30] sm:$0xff] }
 0x150   : > { %612 = vmatpush1.msra.mxu0 %v559_v1 }
 0x151   : > { %1092 = vmatmul.mubr.msk.f32.vlgmr.msra.gmra.mxu0 %vm570_vm7, %v569_v0 }
 0x152   : > { %v656_v2 = vpop.permute.xlu0 %655 }
 0x153   : > { %v664_v4 = vpop.permute.xlu1 %663 }
 0x211   : > { %v647_v3 = vpop.f32.mrf.mxu0 }
 0x212   : > { %v658_v6 = vmul.f32 %v656_v2, %v647_v3 }
 0x213   : > { %v649_v7 = vpop.f32.mrf.mxu0 }
 0x214   : > { %v666_v8 = vadd.f32 %v664_v4, %v658_v6  ;;  %v659_v9 = vmul.f32 %v656_v2, %v649_v7 }
 0x216   : > { %v667_v10 = vadd.f32 %v664_v4, %v659_v9  ;;  %v668_v11 = vmax.f32 %v666_v8, 0.0 }
 0x218   : > { %v669_v13 = vmax.f32 %v667_v10, 0.0 }
 0x21a   : > { %v674_v14 = vcombine.low %v668_v11, %v669_v13 }
 0x21c   : > { %675 = vrot.lane.b32.xlu1 %v674_v14, %s1282_s17 }
 0x28e   : > { %v676_v16 = vpop.permute.xlu1 %675 }
 0x28f   : > { %v677_v17 = vrot.slane %v676_v16, 4 }
 0x291   : > { %v678_v18 = vsel %vm329_vm4, %v677_v17, %v676_v16  ;;  %682 = vst.msk [vmem:[#allocation3 + $0x8] sm:$0xf] %vm321_vm0, %v677_v17 }
 0x292   : > { %681 = vst.msk [vmem:[#allocation3] sm:$0xff] %vm1430_vm5, %v678_v18 }
 0x298   : > { %v748_v19 = vld [vmem:[#allocation3 + $0x8] sm:$0xf] }
 0x299   : > { %v785_v21 = vld [vmem:[#allocation3 + $0x8] sm:$0xf]  ;;  %v683_v22 = vld [vmem:[#allocation3] sm:$0xff]  ;;  %756 = vrot.lane.b32.xlu0 %v748_v19, %s1288_s25 }
 0x29a   : > { %811 = vrot.lane.b32.xlu1 %v683_v22, %s1289_s26  ;;  %v787_v23 = vmul.f32 %v785_v21, %v1438_v20  ;;  %v684_v24 = vmul.f32 %v683_v22, %v1426_v12  ;;  %v1176_v25 = vld [vmem:[#allocation3 + $0x8] ss:$0 sps:$4 sm:$0xff]   ;;  %v823_v12 = vmul.f32 %v683_v22, %v1460_v35  ;;  %v786_v31 = vmul.f32 %v683_v22, %v1464_v37 }
 0x29b   : > { %v709_v15 = vld [vmem:[#allocation3 + $0x8] sm:$0xf]  ;;  %v807_v33 = vcombine.low %v683_v22, %v683_v22  ;;  %v751_v36 = vcombine.high %v683_v22, %v683_v22  ;;  %v766_v35 = vmul.f32 %v683_v22, %v1484_v47  ;;  %v729_v40 = vmul.f32 %v683_v22, %v1492_v52 }
 0x29c   : > { %v686_v26 = vcombine.high %v684_v24, %v684_v24  ;;  %688 = vst [vmem:[#allocation5 + $0x48] sm:$0xf] %v684_v24  ;;  %v822_v28 = vld [vmem:[#allocation3 + $0x8] sm:$0xf]  ;;  %v711_v30 = vmul.f32 %v709_v15, %v1451_v27  ;;  %v710_v41 = vmul.f32 %v683_v22, %v1499_v55  ;;  %v790_v47 = vcombine.high %v786_v31, %v786_v31  ;;  %v931_v55 = vld [vmem:[%s1653_s6] sm:$0xf] }
 0x29d   : > { %795 = vrot.lane.b32.xlu0 %v787_v23, %s1290_s10  ;;  %v824_v20 = vmul.f32 %v822_v28, %v1453_v29  ;;  %v765_v32 = vld [vmem:[#allocation3 + $0x8] sm:$0xf]  ;;  %v733_v42 = vcombine.low %v729_v40, %v729_v40 }
 0x29e   : > { %752 = vrot.lane.b32.xlu1 %v683_v22, %s1288_s25  ;;  %689 = vst [vmem:[#allocation5] sm:$0xf] %v686_v26  ;;  %v767_v34 = vmul.f32 %v765_v32, %v1470_v39  ;;  %v728_v27 = vld [vmem:[#allocation3 + $0x8] sm:$0xf]  ;;  %v827_v39 = vcombine.high %v823_v12, %v823_v12  ;;  %v714_v44 = vcombine.high %v710_v41, %v710_v41 }
 0x29f   : > { %v730_v38 = vmul.f32 %v728_v27, %v1476_v43  ;;  %v770_v43 = vcombine.low %v766_v35, %v766_v35  ;;  %v1177_v52 = vld [vmem:[#allocation3 + $0x8] ss:$0 sps:$4 sm:$0xff]  }
 0x2a0   : > { %v771_v29 = vcombine.low %v767_v34, %v767_v34 }
 0x2a1   : > { %813 = vrot.lane.b32.xlu0 %v1176_v25, %s1289_s26  ;;  %v734_v37 = vcombine.low %v730_v38, %v730_v38 }
 0x2a2   : > { %698 = vrot.lane.b32.xlu1 %v683_v22, %s1291_s12 }
 0x2a5   : > { %719 = vrot.lane.b32.xlu0 %v711_v30, %s1292_s13 }
 0x2a6   : > { %832 = vrot.lane.b32.xlu1 %v824_v20, %s1293_s18 }
 0x2a9   : > { %828 = vrot.lane.b32.xlu0 %v823_v12, %s1293_s18 }
 0x2aa   : > { %791 = vrot.lane.b32.xlu1 %v786_v31, %s1290_s10 }
 0x2ad   : > { %809 = vrot.lane.b32.xlu0 %v807_v33, %s1289_s26 }
 0x2ae   : > { %754 = vrot.lane.b32.xlu1 %v751_v36, %s1288_s25 }
 0x2b1   : > { %776 = vrot.lane.b32.xlu0 %v771_v29, %s1294_s19  ;;  %v850_v29 = vld [vmem:[%s1652_s5] sm:$0xf] }
 0x2b2   : > { %774 = vrot.lane.b32.xlu1 %v766_v35, %s1294_s19 }
 0x2b5   : > { %739 = vrot.lane.b32.xlu0 %v734_v37, %s1295_s20 }
 0x2b6   : > { %737 = vrot.lane.b32.xlu1 %v729_v40, %s1295_s20 }
 0x2b9   : > { %830 = vrot.lane.b32.xlu0 %v827_v39, %s1293_s18  ;;  %s1297_s18 = smov [#allocation9]  }
 0x2ba   : > { %715 = vrot.lane.b32.xlu1 %v710_v41, %s1292_s13 }
 0x2bd   : > { %772 = vrot.lane.b32.xlu0 %v770_v43, %s1294_s19 }
 0x2be   : > { %793 = vrot.lane.b32.xlu1 %v790_v47, %s1290_s10  ;;  %s1218_s10 = sshll.u32 %s1297_s18, 4  ;;  %s1219_s10 = int_to_ptr.vmem [resolvable:$false] %s1218_s10 }
 0x2c1   : > { %735 = vrot.lane.b32.xlu0 %v733_v42, %s1295_s20  ;;  %s1102_s20 = sshll.u32 %s1364_s9, 7  ;;  %s1220_s9 = scalar_lea.vmem %s1219_s10, 256 }
 0x2c2   : > { %717 = vrot.lane.b32.xlu1 %v714_v44, %s1292_s13  ;;  %s309_s13 = sand.u32 1, %s1270_s28   ;;  %s1007_s17 = scalar_lea.hbm %s1655_s8, %s1102_s20 }
 0x2c3   : > { %s1086_s19 = sshll.u32 %s309_s13, 3  ;;  %s995_s25 = scalar_lea.sflag [#allocation8], %s309_s13 }
 0x2c4   : > { %s311_s21 = scalar_lea.vmem [#allocation9], %s1086_s19 }
 0x2c5   : > { %700 = vrot.lane.b32.xlu0 %v1177_v52, %s1291_s12  ;;  %s1009_s22 = sshll.u32 %s311_s21, 4  ;;  %s1010_s22 = int_to_ptr.vmem [resolvable:$true] %s1009_s22 }
 0x2c6   : > { %696 = vrot.lane.b32.xlu1 %v807_v33, %s1291_s12  ;;  %s1214_s26 = scalar_lea.vmem %s1010_s22, 128  ;;  %p1221_p11 = scmp.lt.s32.totalorder %s1010_s22, %s1219_s10 }
 0x2c7   : > { %p1215_p6 = scmp.ne.s32.totalorder %s1010_s22, %s1214_s26  ;;  %p1222_p12 = scmp.lt.s32.totalorder %s1220_s9, %s1214_s26 }
 0x2c9   : > { %934 = vperm.xlu0 %1169, %v931_v55   ;;  %p1216_p9 = pnand %p1215_p6, %p1381_p5  ;;  %p1223_p13 = por %p1222_p12, %p1221_p11 }
 0x2ca   : > { %942 = vperm.xlu1 %1170, %v939_v45  }
 0x2cb   : > { %p1217_p10 = pneg %p1216_p9 }
 0x2cd   : > { %p1224_p0 = pnand %p1223_p13, %p1217_p10 }
 0x30b   : > { %v757_v46 = vpop.permute.xlu0 %756 }
 0x30c   : > { %v812_v48 = vpop.permute.xlu1 %811 }
 0x30f   : > { %v796_v49 = vpop.permute.xlu0 %795 }
 0x310   : > { %v753_v50 = vpop.permute.xlu1 %752 }
 0x313   : > { %v814_v51 = vpop.permute.xlu0 %813 }
 0x314   : > { %v816_v53 = vsel %vm525_vm11, %v812_v48, %v814_v51  ;;  %v699_v54 = vpop.permute.xlu1 %698 }
 0x315   : > { %820 = vst [vmem:[#allocation5 + $0x18] sm:$0xf0] %v816_v53 }
 0x317   : > { %v720_v56 = vpop.permute.xlu0 %719 }
 0x318   : > { %v833_v57 = vpop.permute.xlu1 %832 }
 0x31b   : > { %v829_v58 = vpop.permute.xlu0 %828 }
 0x31c   : > { %v792_v59 = vpop.permute.xlu1 %791 }
 0x31f   : > { %v810_v60 = vpop.permute.xlu0 %809 }
 0x320   : > { %v815_v61 = vsel %vm525_vm11, %v810_v60, %v812_v48  ;;  %v755_v62 = vpop.permute.xlu1 %754 }
 0x321   : > { %819 = vst [vmem:[#allocation5 + $0x30] sm:$0xf0] %v815_v61  ;;  %v758_v63 = vsel %vm451_vm12, %v753_v50, %v755_v62  ;;  %v759_v0 = vsel %vm451_vm12, %v755_v62, %v757_v46 }
 0x322   : > { %762 = vst [vmem:[#allocation5 + $0x38] sm:$0xf] %v758_v63  ;;  %763 = vst [vmem:[#allocation5 + $0x8] sm:$0xf] %v759_v0 }
 0x323   : > { %v777_v1 = vpop.permute.xlu0 %776 }
 0x324   : > { %v775_v2 = vpop.permute.xlu1 %774 }
 0x325   : > { %v779_v3 = vsel %vm479_vm13, %v775_v2, %v777_v1 }
 0x326   : > { %783 = vst [vmem:[#allocation5 + $0x8] sm:$0xf0] %v779_v3 }
 0x327   : > { %v740_v4 = vpop.permute.xlu0 %739 }
 0x328   : > { %v738_v6 = vpop.permute.xlu1 %737 }
 0x329   : > { %v742_v7 = vsel %vm433_vm14, %v738_v6, %v740_v4 }
 0x32a   : > { %746 = vst [vmem:[#allocation5 + $0x40] sm:$0xf0] %v742_v7 }
 0x32b   : > { %v831_v8 = vpop.permute.xlu0 %830 }
 0x32c   : > { %v834_v9 = vsel %vm552_vm15, %v829_v58, %v831_v8  ;;  %v835_v10 = vsel %vm552_vm15, %v831_v8, %v833_v57  ;;  %v716_v11 = vpop.permute.xlu1 %715 }
 0x32d   : > { %838 = vst [vmem:[#allocation5 + $0x28] sm:$0xf] %v834_v9  ;;  %839 = vst [vmem:[#allocation5 + $0x20] sm:$0xf] %v835_v10  ;;  %v845_v32 = vld [vmem:[#allocation5 + $0x8] sm:$0xff] }
 0x32f   : > { %v773_v13 = vpop.permute.xlu0 %772 }
 0x330   : > { %v778_v14 = vsel %vm479_vm13, %v773_v13, %v775_v2  ;;  %v794_v16 = vpop.permute.xlu1 %793  ;;  %v983_v13 = vcombine.high %v1416_v5, %v1416_v5 }
 0x331   : > { %782 = vst [vmem:[#allocation5 + $0x38] sm:$0xf0] %v778_v14  ;;  %v797_v17 = vsel %vm506_vm1, %v792_v59, %v794_v16  ;;  %v798_v18 = vsel %vm506_vm1, %v794_v16, %v796_v49 }
 0x332   : > { %801 = vst [vmem:[#allocation5 + $0x30] sm:$0xf] %v797_v17  ;;  %802 = vst [vmem:[#allocation5 + $0x18] sm:$0xf] %v798_v18 }
 0x333   : > { %v736_v19 = vpop.permute.xlu0 %735 }
 0x334   : > { %v741_v21 = vsel %vm433_vm14, %v736_v19, %v738_v6  ;;  %v718_v22 = vpop.permute.xlu1 %717  ;;  %v849_v23 = vld [vmem:[#allocation5 + $0x20] sm:$0xf]  ;;  %v848_v24 = vld [vmem:[#allocation5 + $0x28] sm:$0xf] }
 0x335   : > { %745 = vst [vmem:[#allocation5 + $0x10] sm:$0xf0] %v741_v21  ;;  %v721_v25 = vsel %vm405_vm2, %v716_v11, %v718_v22  ;;  %v722_v26 = vsel %vm405_vm2, %v718_v22, %v720_v56  ;;  %1093 = vmatprep.subr.msk.mxu1 %vm574_vm3, %v849_v23 }
 0x336   : > { %725 = vst [vmem:[#allocation5 + $0x10] sm:$0xf] %v721_v25  ;;  %726 = vst [vmem:[#allocation5 + $0x40] sm:$0xf] %v722_v26  ;;  %1094 = vmatpush1.msk.msra.mxu1 %vm574_vm3, %v848_v24 }
 0x337   : > { %v701_v15 = vpop.permute.xlu0 %700 }
 0x338   : > { %v703_v28 = vsel %vm368_vm6, %v699_v54, %v701_v15  ;;  %v697_v30 = vpop.permute.xlu1 %696  ;;  %v844_v33 = vld [vmem:[#allocation5 + $0x38] sm:$0xff] }
 0x339   : > { %707 = vst [vmem:[#allocation5] sm:$0xf0] %v703_v28  ;;  %v702_v20 = vsel %vm368_vm6, %v697_v30, %v699_v54  ;;  %v847_v12 = vld [vmem:[#allocation5 + $0x18] sm:$0xff]  ;;  %v846_v31 = vld [vmem:[#allocation5 + $0x30] sm:$0xff] }
 0x33a   : > { %706 = vst [vmem:[#allocation5 + $0x48] sm:$0xf0] %v702_v20  ;;  %884 = vmatprep.subr.mxu1 %v847_v12 }
 0x33b   : > { %885 = vmatpush1.msra.mxu1 %v846_v31 }
 0x33c   : > { %886 = vmatprep.subr.mxu1 %v845_v32 }
 0x33d   : > { %887 = vmatpush1.msra.mxu1 %v844_v33  ;;  %v843_v34 = vld [vmem:[#allocation5 + $0x40] sm:$0xff]  ;;  %v842_v36 = vld [vmem:[#allocation5 + $0x10] sm:$0xff] }
 0x33e   : > { %888 = vmatprep.subr.mxu1 %v843_v34 }
 0x33f   : > { %889 = vmatpush1.msra.mxu1 %v842_v36 }
 0x340   : > { %v841_v27 = vld [vmem:[#allocation5] sm:$0xff] }
 0x341   : > { %890 = vmatprep.subr.mxu1 %v841_v27  ;;  %v840_v38 = vld [vmem:[#allocation5 + $0x48] sm:$0xff] }
 0x342   : > { %891 = vmatpush1.msra.mxu1 %v840_v38 }
 0x343   : > { %1095 = vmatmul.mubr.msk.f32.vlgmr.msra.gmra.mxu1 %vm570_vm7, %v850_v29 }
 0x344   : > { %v935_v35 = vpop.permute.xlu0 %934 }
 0x345   : > { %v943_v39 = vpop.permute.xlu1 %942 }
 0x403   : > { %v926_v37 = vpop.f32.mrf.mxu1 }
 0x404   : > { %v937_v40 = vmul.f32 %v935_v35, %v926_v37 }
 0x405   : > { %v928_v41 = vpop.f32.mrf.mxu1 }
 0x406   : > { %v945_v43 = vadd.f32 %v943_v39, %v937_v40  ;;  %v938_v47 = vmul.f32 %v935_v35, %v928_v41 }
 0x408   : > { %v946_v42 = vadd.f32 %v943_v39, %v938_v47  ;;  %v947_v44 = vsel %vm574_vm3, %v945_v43, 0.0 }
 0x40a   : > { %v948_v52 = vsel %vm574_vm3, %v946_v42, 0.0 }
 0x40b   : > { %v949_v55 = vadd.f32 %v948_v52, %v947_v44 }
 0x40d   : > { %950 = vadd.xlane.f32.xlu0 %v949_v55 }
 0x496   : > { %v951_v45 = vpop.xlane.xlu0 %950 }
 0x497   : > { %v953_v46 = vmul.f32 0.00390625, %v951_v45 }
 0x499   : > { %v954_v48 = vsub.f32 %v945_v43, %v953_v46  ;;  %v955_v49 = vsub.f32 %v946_v42, %v953_v46 }
 0x49b   : > { %v956_v50 = vmul.f32 %v954_v48, %v954_v48  ;;  %v957_v51 = vmul.f32 %v955_v49, %v955_v49 }
 0x49d   : > { %v958_v53 = vsel %vm574_vm3, %v956_v50, 0.0  ;;  %v959_v54 = vsel %vm574_vm3, %v957_v51, 0.0 }
 0x49e   : > { %v960_v56 = vadd.f32 %v959_v54, %v958_v53 }
 0x4a0   : > { %961 = vadd.xlane.f32.xlu1 %v960_v56 }
 0x529   : > { %v962_v57 = vpop.xlane.xlu1 %961 }
 0x52a   : > { %v963_v58 = vmul.f32 0.003921569, %v962_v57 }
 0x52c   : > { %v964_v59 = vadd.f32 1e-05, %v963_v58 }
 0x52e   : > { %v965_v60 = vmul.f32 4.0, %v964_v59 }
 0x530   : > { %1178 = vrcp.f32 %v965_v60 }
 0x53d   : > { %v1179_v61 = vpop.eup %1178 }
 0x53e   : > { %v967_v62 = vmul.f32 %v1179_v61, %v956_v50  ;;  %v968_v63 = vmul.f32 %v1179_v61, %v957_v51 }
 0x540   : > { %v969_v0 = vadd.f32 0.5, %v967_v62  ;;  %v970_v1 = vadd.f32 0.5, %v968_v63 }
 0x542   : > { %v971_v2 = vsub.f32 0.0, %v969_v0  ;;  %v972_v3 = vsub.f32 0.0, %v970_v1 }
 0x544   : > { %v973_v4 = vmul.f32 1.442695, %v971_v2  ;;  %v975_v6 = vmul.f32 1.442695, %v972_v3 }
 0x546   : > { %1180 = vpow2.f32 %v973_v4 }
 0x547   : > { %1182 = vpow2.f32 %v975_v6 }
 0x553   : > { %v1181_v7 = vpop.eup %1180 }
 0x554   : > { %v1183_v8 = vpop.eup %1182  ;;  %v977_v9 = vadd.f32 1.0, %v1181_v7 }
 0x555   : > { %v978_v10 = vadd.f32 1.0, %v1183_v8 }
 0x556   : > { %1184 = vrcp.f32 %v977_v9 }
 0x557   : > { %1186 = vrcp.f32 %v978_v10 }
 0x563   : > { %v1185_v11 = vpop.eup %1184 }
 0x564   : > { %v1187_v14 = vpop.eup %1186  ;;  %v981_v16 = vmul.f32 %v1185_v11, %v945_v43 }
 0x565   : > { %v982_v17 = vmul.f32 %v1187_v14, %v946_v42 }
 0x566   : > { %v985_v18 = vadd.f32 %v981_v16, %v1416_v5 }
 0x567   : > { %v986_v19 = vadd.f32 %v983_v13, %v982_v17 }
 0x568   : > { %v987_v21 = vmax.f32 %v985_v18, 0.0 }
 0x569   : > { %v988_v22 = vmax.f32 %v986_v19, 0.0 }
 0x56b   : > { %v991_v23 = vcombine.low %v987_v21, %v988_v22 }
 0x56d   : > { %993 = vst [vmem:[%s311_s21] sm:$0xff] %v991_v23 }
 0x56e   : > { %1227 = shalt.err (!%p1224_p0)
}
 0x56f   : > { %s1228_s12 = scalar_lea.hbm %s1007_s17, 128  ;;  %s1232_s20 = scalar_lea.hbm %s1655_s8, 256 }
 0x570   : > { %p1229_p1 = scmp.ne.s32.totalorder %s1007_s17, %s1228_s12  ;;  %p1233_p4 = scmp.lt.s32.totalorder %s1007_s17, %s1655_s8 }
 0x571   : > { %p1234_p7 = scmp.lt.s32.totalorder %s1232_s20, %s1228_s12 }
 0x572   : > { %p1230_p2 = pnand %p1229_p1, %p1381_p5 }
 0x573   : > { %p1235_p8 = por %p1234_p7, %p1233_p4 }
 0x574   : > { %p1231_p3 = pneg %p1230_p2 }
 0x576   : > { %p1236_p6 = pnand %p1235_p8, %p1231_p3 }
 0x578   : > { %1239 = shalt.err (!%p1236_p6)
}
 0x579   : > { %1107 = dma.vmem_to_hbm [thread:$0]  (%p1381_p5), %s1010_s22, 128, %s1007_s17, %s995_s25  }
 0x57a PF: > { %p1119_p9 = scmp.ge.s32.totalorder %s1278_s30, 2  ;;  %s1021_s24 = sand.u32 1, %s1266_s27  }
 0x57b   : > { %p1661_p10 = scmp.ne.s32.totalorder %s1657_s16, 0  ;;  %s1022_s26 = scalar_lea.sflag [#allocation8], %s1021_s24 }
 0x57d   : > { %p1114_p11 = pnand %p1119_p9, %p1661_p10 }
 0x57f   : > { %p1115_p12 = pneg %p1114_p11 }
 0x581   : > { %1261 = dma.done.wait (%p1115_p12), %s1022_s26, 128  }
 0x582   : > { %1263 = vsyncadd (%p1115_p12), %s1022_s26, 4294967168  ;;  %p19_p13 = scmp.ge.s32.totalorder %s1368_s11, 4   ;;  %s1662_s27 = smov %s1270_s28 }
 0x583   : > { %s1663_s28 = smov %s1274_s29  ;;  %s1664_s29 = smov %s1379_s14 }
 0x584   : > { %s1665_s30 = smov %s1368_s11  ;;  %21 = sbr.rel (!%p19_p13) target bundleno = 4 (0x4), region = 93 }
 0x589   :  { %1027 = vsyncpa [#allocation7], 1 }
 0x58a   :  { %1029 = vsyncpa [#allocation7 + $0x1], 1 }
 0x58b   :  { %1030 = vsyncpa [#allocation8], 1 }
 0x58c   :  { %1032 = vsyncpa [#allocation8 + $0x1], 1 }

</bundles_post_ra>
